<compile_context>
chip_gen: v5e
topology: v5e:2x2
jax: 0.10.0
libtpu: 0.0.40
codegen_flags: <defaults>
</compile_context>

<pallas_src>
import functools

import jax
import jax.numpy as jnp
from jax import lax
from jax.experimental import pallas as pl
from jax.experimental.pallas import tpu as pltpu


# ---------------------------------------------------------------------------
# Kernels
# ---------------------------------------------------------------------------

def _sum_thw(x):
    """(1, Tt, Ct, HW) f32 -> (1, 1, Ct, 1): sum over the T and H*W axes."""
    return jnp.sum(jnp.sum(x, axis=3, keepdims=True), axis=1, keepdims=True)


def _fused_kernel(x_ref, o_ref, *, eps, inv_n):
    # One block = one (batch, channel-tile) with the FULL (T, H*W) extent, so
    # stats and normalization happen in a single pipelined sweep.
    x = x_ref[...].astype(jnp.float32)
    s = _sum_thw(x)
    sq = _sum_thw(x * x)
    mean = s * inv_n
    var = jnp.maximum(sq * inv_n - mean * mean, 0.0)      # biased variance
    o_ref[...] = ((x - mean) * lax.rsqrt(var + eps)).astype(o_ref.dtype)


def _stats_kernel(x_ref, mean_ref, rstd_ref, *, eps, inv_n):
    # Grid = (B, C/Ct, T/Tt); the last (T) axis is the reduction axis: the
    # (1, 1, Ct, 1) outputs stay resident and accumulate sum / sum-of-squares.
    t = pl.program_id(2)

    @pl.when(t == 0)
    def _():
        mean_ref[...] = jnp.zeros_like(mean_ref)
        rstd_ref[...] = jnp.zeros_like(rstd_ref)

    x = x_ref[...].astype(jnp.float32)
    mean_ref[...] += _sum_thw(x)
    rstd_ref[...] += _sum_thw(x * x)

    @pl.when(t == pl.num_programs(2) - 1)
    def _():
        m = mean_ref[...] * inv_n
        var = jnp.maximum(rstd_ref[...] * inv_n - m * m, 0.0)
        mean_ref[...] = m
        rstd_ref[...] = lax.rsqrt(var + eps)


def _normalize_kernel(x_ref, mean_ref, rstd_ref, o_ref):
    x = x_ref[...].astype(jnp.float32)
    o_ref[...] = ((x - mean_ref[...]) * rstd_ref[...]).astype(o_ref.dtype)


# ---------------------------------------------------------------------------
# Tiling / VMEM budgeting
# ---------------------------------------------------------------------------

def _vmem_capacity_bytes(default=64 << 20):
    try:
        return int(pltpu.get_tpu_info().vmem_capacity_bytes)
    except Exception:
        return default          # conservative (v7x-sized) fallback


def _divisors(n):
    return [d for d in range(1, n + 1) if n % d == 0]


def _work_bytes(tt, ct, hw, itemsize):
    # Double-buffered in + out blocks plus f32 working copies inside the body.
    return tt * ct * hw * (4 * itemsize + 12)


def _choose_tiling(T, C, HW, itemsize, budget):
    """Returns (c_tile, t_tile, single_pass)."""
    # Channel tiles must keep the x-block's second-to-last dim either equal to
    # the full C extent or a multiple of 8 (sublane rule).
    c_opts = sorted([c for c in _divisors(C) if c == C or c % 8 == 0],
                    reverse=True)
    # Preferred: one fused pass with the full (T, H*W) reduction in VMEM.
    for ct in c_opts:
        if _work_bytes(T, ct, HW, itemsize) <= budget:
            return ct, T, True
    # Fallback: tile T and accumulate stats across an "arbitrary" grid axis.
    ct = c_opts[-1]
    for tt in sorted(_divisors(T), reverse=True):
        if _work_bytes(tt, ct, HW, itemsize) <= budget:
            return ct, tt, False
    return ct, 1, False


def _compiler_params(grid_semantics, block_work_bytes, vmem_cap):
    vmem_limit = int(min(0.9 * vmem_cap,
                         max(32 << 20, block_work_bytes + (4 << 20))))
    return pltpu.CompilerParams(
        dimension_semantics=grid_semantics,
        vmem_limit_bytes=vmem_limit,
    )


# ---------------------------------------------------------------------------
# Forward pass
# ---------------------------------------------------------------------------

def instance_norm_3d_ext(x, eps=1e-5, vmem_budget_bytes=None):
    """InstanceNorm3DExt forward.

    x: (B, T, C, H, W). Equivalent to PyTorch's
    `InstanceNorm3d()(x.permute(0, 2, 1, 3, 4)).permute(0, 2, 1, 3, 4)`:
    per-(batch, channel) mean / biased-variance over the (T, H, W) dims,
    affine=False.
    """
    B, T, C, H, W = x.shape
    HW = H * W
    inv_n = 1.0 / float(T * HW)
    itemsize = jnp.dtype(x.dtype).itemsize

    vmem_cap = _vmem_capacity_bytes()
    budget = (vmem_budget_bytes if vmem_budget_bytes is not None
              else int(0.6 * vmem_cap))

    ct, tt, single_pass = _choose_tiling(T, C, HW, itemsize, budget)
    nC = C // ct

    x4 = x.reshape(B, T, C, HW)     # free reshape; no transpose / HBM copy

    if single_pass:
        kernel = functools.partial(_fused_kernel, eps=eps, inv_n=inv_n)
        y4 = pl.pallas_call(
            kernel,
            out_shape=jax.ShapeDtypeStruct((B, T, C, HW), x.dtype),
            grid_spec=pltpu.PrefetchScalarGridSpec(
                num_scalar_prefetch=0,
                grid=(B, nC),
                in_specs=[pl.BlockSpec((1, T, ct, HW),
                                       lambda b, c: (b, 0, c, 0))],
                out_specs=pl.BlockSpec((1, T, ct, HW),
                                       lambda b, c: (b, 0, c, 0)),
            ),
            compiler_params=_compiler_params(
                ("parallel", "parallel"),
                _work_bytes(T, ct, HW, itemsize), vmem_cap),
        )(x4)
        return y4.reshape(B, T, C, H, W)

    # ---- Two-pass fallback: T tiled, stats accumulated across grid axis ----
    nT = T // tt
    x_spec = pl.BlockSpec((1, tt, ct, HW), lambda b, c, t: (b, t, c, 0))
    stat_spec = pl.BlockSpec((1, 1, ct, 1), lambda b, c, t: (b, 0, c, 0))
    stat_shape = jax.ShapeDtypeStruct((B, 1, C, 1), jnp.float32)

    mean, rstd = pl.pallas_call(
        functools.partial(_stats_kernel, eps=eps, inv_n=inv_n),
        out_shape=(stat_shape, stat_shape),
        grid_spec=pltpu.PrefetchScalarGridSpec(
            num_scalar_prefetch=0,
            grid=(B, nC, nT),
            in_specs=[x_spec],
            out_specs=(stat_spec, stat_spec),
        ),
        compiler_params=_compiler_params(
            ("parallel", "parallel", "arbitrary"),
            _work_bytes(tt, ct, HW, itemsize), vmem_cap),
    )(x4)

    y4 = pl.pallas_call(
        _normalize_kernel,
        out_shape=jax.ShapeDtypeStruct((B, T, C, HW), x.dtype),
        grid_spec=pltpu.PrefetchScalarGridSpec(
            num_scalar_prefetch=0,
            grid=(B, nC, nT),
            in_specs=[x_spec, stat_spec, stat_spec],
            out_specs=x_spec,
        ),
        compiler_params=_compiler_params(
            ("parallel", "parallel", "parallel"),
            _work_bytes(tt, ct, HW, itemsize), vmem_cap),
    )(x4, mean, rstd)
    return y4.reshape(B, T, C, H, W)


# ---------------------------------------------------------------------------
# Reference + test
# ---------------------------------------------------------------------------

def _reference(x, eps=1e-5):
    # Pure-JAX reference matching PyTorch InstanceNorm3d on the permuted view:
    # reduce over dims (T, H, W) of the original layout, per (B, C).
    xf = x.astype(jnp.float32)
    mean = jnp.mean(xf, axis=(1, 3, 4), keepdims=True)
    var = jnp.mean((xf - mean) ** 2, axis=(1, 3, 4), keepdims=True)
    return ((xf - mean) * lax.rsqrt(var + eps)).astype(x.dtype)


if __name__ == "__main__":
    key = jax.random.PRNGKey(0)
    B, T, C, H, W = 2, 8, 4, 16, 16   # (batch, seq/depth, channels, H, W)
    x = jax.random.normal(key, (B, T, C, H, W), dtype=jnp.float32) * 2.0 + 0.5

    ref = jax.block_until_ready(_reference(x))

    # Fused single-pass path (whole (T, H*W) reduction resident in VMEM).
    out = jax.block_until_ready(instance_norm_3d_ext(x))
    assert out.shape == x.shape and out.dtype == x.dtype
    err = float(jnp.max(jnp.abs(out - ref)))
    assert err < 1e-4, f"fused path: max abs error too large: {err}"

    # Tiled two-pass fallback (force a tiny VMEM budget so T gets tiled).
    out_tiled = jax.block_until_ready(
        instance_norm_3d_ext(x, vmem_budget_bytes=120_000))
    err_tiled = float(jnp.max(jnp.abs(out_tiled - ref)))
    assert err_tiled < 1e-4, f"tiled path: max abs error too large: {err_tiled}"

    print("KERNEL_OK")
</pallas_src>

<mosaic_0001>
module attributes {stable_mosaic.version = 11 : i64} {
  func.func @_fused_kernel(%arg0: i32, %arg1: i32, %arg2: memref<1x8x4x256xf32, #tpu.memory_space<vmem>>, %arg3: memref<1x8x4x256xf32, #tpu.memory_space<vmem>>) attributes {dimension_semantics = [#tpu.dimension_semantics<parallel>, #tpu.dimension_semantics<parallel>], iteration_bounds = array<i64: 2, 1>, scalar_prefetch = 0 : i64, scratch_operands = 0 : i64, tpu.core_type = #tpu.core_type<tc>, window_params = [{transform_indices = @transform_0, window_bounds = array<i64: 1, 8, 4, 256>}, {transform_indices = @transform_1, window_bounds = array<i64: 1, 8, 4, 256>}]} {
    %c0 = arith.constant 0 : index
    %c0_0 = arith.constant 0 : index
    %c0_1 = arith.constant 0 : index
    %c0_2 = arith.constant 0 : index
    %0 = vector.load %arg2[%c0, %c0_0, %c0_1, %c0_2] : memref<1x8x4x256xf32, #tpu.memory_space<vmem>>, vector<1x8x4x256xf32>
    %cst = arith.constant dense<0.000000e+00> : vector<1x8x4xf32>
    %1 = vector.multi_reduction <add>, %0, %cst [3] : vector<1x8x4x256xf32> to vector<1x8x4xf32>
    %2 = vector.shape_cast %1 : vector<1x8x4xf32> to vector<1x8x4x1xf32>
    %cst_3 = arith.constant dense<0.000000e+00> : vector<1x4x1xf32>
    %3 = vector.multi_reduction <add>, %2, %cst_3 [1] : vector<1x8x4x1xf32> to vector<1x4x1xf32>
    %4 = vector.shape_cast %3 : vector<1x4x1xf32> to vector<1x1x4x1xf32>
    %5 = arith.mulf %0, %0 : vector<1x8x4x256xf32>
    %cst_4 = arith.constant dense<0.000000e+00> : vector<1x8x4xf32>
    %6 = vector.multi_reduction <add>, %5, %cst_4 [3] : vector<1x8x4x256xf32> to vector<1x8x4xf32>
    %7 = vector.shape_cast %6 : vector<1x8x4xf32> to vector<1x8x4x1xf32>
    %cst_5 = arith.constant dense<0.000000e+00> : vector<1x4x1xf32>
    %8 = vector.multi_reduction <add>, %7, %cst_5 [1] : vector<1x8x4x1xf32> to vector<1x4x1xf32>
    %9 = vector.shape_cast %8 : vector<1x4x1xf32> to vector<1x1x4x1xf32>
    %cst_6 = arith.constant 4.8828125E-4 : f32
    %10 = vector.broadcast %cst_6 : f32 to vector<1x1x4x1xf32>
    %11 = arith.mulf %4, %10 : vector<1x1x4x1xf32>
    %cst_7 = arith.constant 4.8828125E-4 : f32
    %12 = vector.broadcast %cst_7 : f32 to vector<1x1x4x1xf32>
    %13 = arith.mulf %9, %12 : vector<1x1x4x1xf32>
    %14 = arith.mulf %11, %11 : vector<1x1x4x1xf32>
    %15 = arith.subf %13, %14 : vector<1x1x4x1xf32>
    %cst_8 = arith.constant 0.000000e+00 : f32
    %16 = vector.broadcast %cst_8 : f32 to vector<1x1x4x1xf32>
    %17 = arith.maximumf %15, %16 : vector<1x1x4x1xf32>
    %18 = vector.broadcast %11 : vector<1x1x4x1xf32> to vector<1x8x4x256xf32>
    %19 = arith.subf %0, %18 : vector<1x8x4x256xf32>
    %cst_9 = arith.constant 9.99999974E-6 : f32
    %20 = vector.broadcast %cst_9 : f32 to vector<1x1x4x1xf32>
    %21 = arith.addf %17, %20 : vector<1x1x4x1xf32>
    %22 = math.rsqrt %21 : vector<1x1x4x1xf32>
    %23 = vector.broadcast %22 : vector<1x1x4x1xf32> to vector<1x8x4x256xf32>
    %24 = arith.mulf %19, %23 : vector<1x8x4x256xf32>
    %c0_10 = arith.constant 0 : index
    %c0_11 = arith.constant 0 : index
    %c0_12 = arith.constant 0 : index
    %c0_13 = arith.constant 0 : index
    %25 = vector.load %arg3[%c0_10, %c0_11, %c0_12, %c0_13] : memref<1x8x4x256xf32, #tpu.memory_space<vmem>>, vector<1x8x4x256xf32>
    tpu.vector_store %arg3[%c0_10, %c0_11, %c0_12, %c0_13], %24 {strides = array<i32>} : memref<1x8x4x256xf32, #tpu.memory_space<vmem>>, vector<1x8x4x256xf32>,
    return
  }
  func.func @transform_0(%arg0: i32, %arg1: i32) -> (i32, i32, i32, i32) {
    %c0_i32 = arith.constant 0 : i32
    %c0_i32_0 = arith.constant 0 : i32
    %c0_i32_1 = arith.constant 0 : i32
    return %arg0, %c0_i32, %arg1, %c0_i32_0 : i32, i32, i32, i32
  }
  func.func @transform_1(%arg0: i32, %arg1: i32) -> (i32, i32, i32, i32) {
    %c0_i32 = arith.constant 0 : i32
    %c0_i32_0 = arith.constant 0 : i32
    %c0_i32_1 = arith.constant 0 : i32
    return %arg0, %c0_i32, %arg1, %c0_i32_0 : i32, i32, i32, i32
  }
}

</mosaic_0001>

<bundles_post_ra>
// kernel: tpu_custom_call.1
= control target key start
LH: loop header
LB: loop body
LE: loop exit
PB: predicated region body
PF: predicated region fallthrough
CT: control target
= control target key end

     0   :  { %6 = vsyncpa [#allocation3], 0  ;;  %s976_s0 = inlined_call_operand.hbm [shape: f32[2,8,4,256], index: 0, kind: input, shape index: {}]   ;;  %s977_s1 = inlined_call_operand.hbm [shape: f32[2,8,4,256], index: 1, kind: output, shape index: {}]  }
   0x1   :  { %8 = vsyncpa [#allocation3 + $0x1], 0 }
   0x2   :  { %9 = vsyncpa [#allocation4], 0 }
   0x3   :  { %11 = vsyncpa [#allocation4 + $0x1], 0  ;;  %s756_s6 = smov 0   ;;  %s758_s7 = smov 0  }
   0x4   :  { %s760_s8 = smov 0   ;;  %s762_s9 = smov 0  }
   0x5   :  { %s764_s10 = smov 0   ;;  %s766_s11 = smov 0  }
   0x6 LB: > { %s541_s12 = sadd.s32 4294967295, %s739_s11   ;;  %s542_s13 = sadd.s32 4294967294, %s739_s11   ;;  %s739_s11 = sphi %s766_s11, %s17_s11   ;;  %s735_s10 = sphi %s764_s10, %s986_s10   ;;  %s731_s9 = sphi %s762_s9, %s985_s9   ;;  %s727_s8 = sphi %s760_s8, %s984_s8   ;;  %s723_s7 = sphi %s758_s7, %s983_s7   ;;  %s719_s6 = sphi %s756_s6, %s982_s6  }
   0x7   : > { %s29_s14 = sadd.s32 1, %s735_s10  ;;  %s38_s15 = sadd.s32 1, %s727_s8 }
   0x8   : > { %p31_p0 = scmp.ge.s32.totalorder %s29_s14, 2  ;;  %p45_p1 = scmp.ne.s32.totalorder %s727_s8, %s723_s7 }
   0x9   : > { %p46_p2 = scmp.eq.s32.totalorder %s739_s11, 0  ;;  %p51_p3 = scmp.ne.s32.totalorder %s723_s7, %s719_s6 }
   0xa   : > { %s988_s14 = smov (%p31_p0, %s29_s14), 0  ;;  %p52_p5 = scmp.eq.s32.totalorder %s541_s12, 0 }
   0xb   : > { %p797_p4 = por %p46_p2, %p45_p1  ;;  %s33_s17 = ssub.s32 %s735_s10, %s988_s14 }
   0xc   : > { %p77_p6 = scmp.eq.s32.totalorder %s541_s12, 1  ;;  %p36_p7 = scmp.eq.s32.totalorder %s33_s17, 0 }
   0xd   : > { %p803_p8 = por %p52_p5, %p51_p3  ;;  %p83_p10 = scmp.eq.s32.totalorder %s542_s13, 1 }
   0xe   : > { %p807_p9 = por %p77_p6, %p45_p1  ;;  %p544_p12 = scmp.ge.s32.totalorder %s739_s11, 2 }
   0xf   : > { %s812_s20 = scalar_select %p36_p7, %s727_s8, %s38_s15  }
  0x10   : > { %p814_p11 = por %p83_p10, %p51_p3  ;;  %p570_p13 = scmp.lt.s32.totalorder %s739_s11, 2 }
  0x11   : > { %s103_s22 = sand.u32 1, %s727_s8   ;;  %s556_s24 = sshll.u32 %s735_s10, 6 }
  0x12   : > { %s545_s23 = sshll.u32 %s103_s22, 6  ;;  %s114_s27 = scalar_lea.hbm %s976_s0, %s556_s24 }
  0x13   : > { %s107_s28 = scalar_lea.vmem [#allocation2], %s545_s23  ;;  %s115_s30 = sshll.u32 %s114_s27, 4  ;;  %s116_s30 = int_to_ptr.hbm [resolvable:$true] %s115_s30 }
  0x14   : > { %s117_s29 = sshll.u32 %s107_s28, 4  ;;  %p563_p0 = pnand %p570_p13, %p797_p4  ;;  %s118_s29 = int_to_ptr.vmem [resolvable:$true] %s117_s29 }
  0x15   : > { %p548_p1 = scmp.ge.s32.totalorder %s739_s11, 1  ;;  %s104_s2 = scalar_lea.sflag [#allocation3], %s103_s22 }
  0x16   : > { %s741_s3 = smov 128   ;;  %s742_s4 = smov 8  }
  0x17   : > { %565 = dma.hbm_to_vmem [thread:$0]  (!%p563_p0), %s116_s30, 1024, %s118_s29, %s104_s2, %s741_s3, %s741_s3, %s742_s4  }
  0x18   : > { %p125_p2 = scmp.lt.s32.totalorder %s739_s11, 3 }
  0x1a   : > { %p126_p3 = pnand %p548_p1, %p125_p2 }
  0x1b   : > { %s830_s5 = sand.u32 (!%p126_p3), 1, %s723_s7  }
  0x1c   : > { %129 = sbr.rel (%p126_p3) target bundleno = 248 (0xf8), region = 24  ;;  %s549_s12 = sshll.u32 (!%p126_p3), %s830_s5, 6 }
  0x1d   : > { %s132_s13 = scalar_lea.sflag (!%p126_p3), [#allocation3], %s830_s5  ;;  %s135_s15 = scalar_lea.vmem (!%p126_p3), [#allocation2], %s549_s12 }
  0x21   : > { %710 = dma.done.wait (%p803_p8), %s132_s13, 1024  }
  0x22   : > { %712 = vsyncadd (%p803_p8), %s132_s13, 4294966272  ;;  %v840_v0 = vld [vmem:[%s135_s15 + $0x10] sm:$0xff]  ;;  %v842_v1 = vld [vmem:[%s135_s15] sm:$0xff]  ;;  %vm214_vm0 = vcmask 1043456   ;;  %s557_s16 = sshll.u32 %s731_s9, 6  ;;  %s154_s9 = scalar_lea.vmem [#allocation5], %s549_s12 }
  0x23   : > { %179 = vst [vmem:[#allocation1 + $0x20] ss:$2 sm:$0xff] %v840_v0  ;;  %v845_v2 = vld [vmem:[%s135_s15 + $0x18] sm:$0xff]  ;;  %v848_v3 = vld [vmem:[%s135_s15 + $0x8] sm:$0xff]  ;;  %v852_v4 = vld [vmem:[%s135_s15 + $0x30] sm:$0xff]  ;;  %v272_v20 = vmul.f32 %v840_v0, %v840_v0  ;;  %v270_v26 = vmul.f32 %v842_v1, %v842_v1  ;;  %s450_s22 = scalar_lea.hbm %s977_s1, %s557_s16  ;;  %s451_s23 = sshll.u32 %s154_s9, 4  ;;  %s452_s23 = int_to_ptr.vmem [resolvable:$true] %s451_s23 }
  0x24   : > { %171 = vst [vmem:[#allocation1] ss:$2 sm:$0xff] %v842_v1  ;;  %v854_v5 = vld [vmem:[%s135_s15 + $0x20] sm:$0xff]  ;;  %v859_v10 = vld [vmem:[%s135_s15 + $0x38] sm:$0xff]  ;;  %v864_v16 = vld [vmem:[%s135_s15 + $0x28] sm:$0xff]  ;;  %v273_v31 = vmul.f32 %v845_v2, %v845_v2  ;;  %v271_v37 = vmul.f32 %v848_v3, %v848_v3  ;;  %v276_v44 = vmul.f32 %v852_v4, %v852_v4  ;;  %s453_s24 = sshll.u32 %s450_s22, 4  ;;  %s454_s24 = int_to_ptr.hbm [resolvable:$true] %s453_s24 }
  0x25   : > { %183 = vst [vmem:[#allocation1 + $0x30] ss:$2 sm:$0xff] %v845_v2  ;;  %v274_v47 = vmul.f32 %v854_v5, %v854_v5  ;;  %v277_v52 = vmul.f32 %v859_v10, %v859_v10  ;;  %v275_v56 = vmul.f32 %v864_v16, %v864_v16  ;;  %s437_s25 = scalar_lea.sflag [#allocation4], %s830_s5  ;;  %s671_s26 = sshra.s32 %s454_s24, 4  ;;  %s672_s26 = int_to_ptr.hbm [resolvable:$true] %s671_s26 }
  0x26   : > { %175 = vst [vmem:[#allocation1 + $0x10] ss:$2 sm:$0xff] %v848_v3  ;;  %s673_s27 = scalar_lea.hbm %s672_s26, 64  ;;  %s677_s30 = scalar_lea.hbm %s977_s1, 128 }
  0x27   : > { %p674_p4 = scmp.ne.s32.totalorder %s672_s26, %s673_s27  ;;  %p678_p7 = scmp.lt.s32.totalorder %s672_s26, %s977_s1 }
  0x28   : > { %p679_p8 = scmp.lt.s32.totalorder %s677_s30, %s673_s27 }
  0x29   : > { %p675_p5 = pnand %p674_p4, %p807_p9 }
  0x2a   : > { %v180_v6 = vld.sshfl [vmem:[#allocation1 + $0x20] sm:$0xff pattern:$0x75316420]  ;;  %v181_v7 = vld.sshfl [vmem:[#allocation1 + $0x28] sm:$0xff pattern:$0x75316420]  ;;  %p680_p10 = por %p679_p8, %p678_p7 }
  0x2b   : > { %v225_v8 = vsel %vm214_vm0, %v180_v6, 0.0  ;;  %v226_v9 = vsel %vm214_vm0, %v181_v7, 0.0  ;;  %192 = vst [vmem:[#allocation1 + $0x20] ss:$2 sm:$0xff] %v852_v4  ;;  %p676_p6 = pneg %p675_p5 }
  0x2c   : > { %v227_v11 = vadd.f32 %v226_v9, %v225_v8  ;;  %v172_v12 = vld.sshfl [vmem:[#allocation1] sm:$0xff pattern:$0x75316420]  ;;  %v173_v13 = vld.sshfl [vmem:[#allocation1 + $0x8] sm:$0xff pattern:$0x75316420] }
  0x2d   : > { %v215_v14 = vsel %vm214_vm0, %v172_v12, 0.0  ;;  %v216_v15 = vsel %vm214_vm0, %v173_v13, 0.0  ;;  %186 = vst [vmem:[#allocation1] ss:$2 sm:$0xff] %v854_v5  ;;  %p681_p13 = pnand %p680_p10, %p676_p6 }
  0x2e   : > { %228 = vadd.xlane.f32.xlu1 %v227_v11  ;;  %v217_v17 = vadd.f32 %v216_v15, %v215_v14  ;;  %v184_v18 = vld.sshfl [vmem:[#allocation1 + $0x30] sm:$0xff pattern:$0x75316420]  ;;  %v185_v19 = vld.sshfl [vmem:[#allocation1 + $0x38] sm:$0xff pattern:$0x75316420] }
  0x2f   : > { %v230_v21 = vsel %vm214_vm0, %v184_v18, 0.0  ;;  %v231_v22 = vsel %vm214_vm0, %v185_v19, 0.0  ;;  %195 = vst [vmem:[#allocation1 + $0x30] ss:$2 sm:$0xff] %v859_v10 }
  0x30   : > { %218 = vadd.xlane.f32.xlu0 %v217_v17  ;;  %v232_v23 = vadd.f32 %v231_v22, %v230_v21  ;;  %v176_v24 = vld.sshfl [vmem:[#allocation1 + $0x10] sm:$0xff pattern:$0x75316420]  ;;  %v177_v25 = vld.sshfl [vmem:[#allocation1 + $0x18] sm:$0xff pattern:$0x75316420] }
  0x31   : > { %189 = vst [vmem:[#allocation1 + $0x10] ss:$2 sm:$0xff] %v864_v16  ;;  %v220_v27 = vsel %vm214_vm0, %v176_v24, 0.0  ;;  %v221_v28 = vsel %vm214_vm0, %v177_v25, 0.0 }
  0x32   : > { %233 = vadd.xlane.f32.xlu2 %v232_v23  ;;  %v193_v29 = vld.sshfl [vmem:[#allocation1 + $0x20] sm:$0xff pattern:$0x75316420]  ;;  %v194_v30 = vld.sshfl [vmem:[#allocation1 + $0x28] sm:$0xff pattern:$0x75316420]  ;;  %v222_v34 = vadd.f32 %v221_v28, %v220_v27 }
  0x33   : > { %v245_v32 = vsel %vm214_vm0, %v193_v29, 0.0  ;;  %v246_v33 = vsel %vm214_vm0, %v194_v30, 0.0  ;;  %294 = vst [vmem:[#allocation1 + $0x20] ss:$2 sm:$0xff] %v272_v20 }
  0x34   : > { %v187_v35 = vld.sshfl [vmem:[#allocation1] sm:$0xff pattern:$0x75316420]  ;;  %v188_v36 = vld.sshfl [vmem:[#allocation1 + $0x8] sm:$0xff pattern:$0x75316420]  ;;  %v247_v43 = vadd.f32 %v246_v33, %v245_v32 }
  0x35   : > { %v235_v38 = vsel %vm214_vm0, %v187_v35, 0.0  ;;  %v236_v39 = vsel %vm214_vm0, %v188_v36, 0.0  ;;  %286 = vst [vmem:[#allocation1] ss:$2 sm:$0xff] %v270_v26 }
  0x36   : > { %v196_v40 = vld.sshfl [vmem:[#allocation1 + $0x30] sm:$0xff pattern:$0x75316420]  ;;  %v197_v41 = vld.sshfl [vmem:[#allocation1 + $0x38] sm:$0xff pattern:$0x75316420]  ;;  %v237_v42 = vadd.f32 %v236_v39, %v235_v38 }
  0x37   : > { %298 = vst [vmem:[#allocation1 + $0x30] ss:$2 sm:$0xff] %v273_v31  ;;  %v250_v26 = vsel %vm214_vm0, %v196_v40, 0.0  ;;  %v251_v27 = vsel %vm214_vm0, %v197_v41, 0.0 }
  0x38   : > { %223 = vadd.xlane.f32.xlu0 %v222_v34  ;;  %238 = vadd.xlane.f32.xlu1 %v237_v42  ;;  %v190_v45 = vld.sshfl [vmem:[#allocation1 + $0x10] sm:$0xff pattern:$0x75316420]  ;;  %v191_v46 = vld.sshfl [vmem:[#allocation1 + $0x18] sm:$0xff pattern:$0x75316420]  ;;  %v252_v31 = vadd.f32 %v251_v27, %v250_v26 }
  0x39   : > { %v240_v48 = vsel %vm214_vm0, %v190_v45, 0.0  ;;  %v241_v49 = vsel %vm214_vm0, %v191_v46, 0.0  ;;  %290 = vst [vmem:[#allocation1 + $0x10] ss:$2 sm:$0xff] %v271_v37 }
  0x3a   : > { %248 = vadd.xlane.f32.xlu2 %v247_v43  ;;  %v295_v50 = vld.sshfl [vmem:[#allocation1 + $0x20] sm:$0xff pattern:$0x75316420]  ;;  %v296_v51 = vld.sshfl [vmem:[#allocation1 + $0x28] sm:$0xff pattern:$0x75316420]  ;;  %v242_v53 = vadd.f32 %v241_v49, %v240_v48 }
  0x3b   : > { %307 = vst [vmem:[#allocation1 + $0x20] ss:$2 sm:$0xff] %v276_v44  ;;  %v339_v8 = vsel %vm214_vm0, %v295_v50, 0.0  ;;  %v340_v9 = vsel %vm214_vm0, %v296_v51, 0.0 }
  0x3c   : > { %v287_v54 = vld.sshfl [vmem:[#allocation1] sm:$0xff pattern:$0x75316420]  ;;  %v288_v55 = vld.sshfl [vmem:[#allocation1 + $0x8] sm:$0xff pattern:$0x75316420]  ;;  %v341_v12 = vadd.f32 %v340_v9, %v339_v8 }
  0x3d   : > { %301 = vst [vmem:[#allocation1] ss:$2 sm:$0xff] %v274_v47  ;;  %v329_v57 = vsel %vm214_vm0, %v287_v54, 0.0  ;;  %v330_v58 = vsel %vm214_vm0, %v288_v55, 0.0 }
  0x3e   : > { %v331_v59 = vadd.f32 %v330_v58, %v329_v57  ;;  %v299_v60 = vld.sshfl [vmem:[#allocation1 + $0x30] sm:$0xff pattern:$0x75316420]  ;;  %v300_v61 = vld.sshfl [vmem:[#allocation1 + $0x38] sm:$0xff pattern:$0x75316420] }
  0x3f   : > { %310 = vst [vmem:[#allocation1 + $0x30] ss:$2 sm:$0xff] %v277_v52  ;;  %v344_v18 = vsel %vm214_vm0, %v299_v60, 0.0  ;;  %v345_v19 = vsel %vm214_vm0, %v300_v61, 0.0 }
  0x40   : > { %243 = vadd.xlane.f32.xlu0 %v242_v53  ;;  %332 = vadd.xlane.f32.xlu1 %v331_v59  ;;  %v291_v62 = vld.sshfl [vmem:[#allocation1 + $0x10] sm:$0xff pattern:$0x75316420]  ;;  %v292_v63 = vld.sshfl [vmem:[#allocation1 + $0x18] sm:$0xff pattern:$0x75316420]  ;;  %v346_v21 = vadd.f32 %v345_v19, %v344_v18 }
  0x41   : > { %v334_v6 = vsel %vm214_vm0, %v291_v62, 0.0  ;;  %v335_v7 = vsel %vm214_vm0, %v292_v63, 0.0  ;;  %304 = vst [vmem:[#allocation1 + $0x10] ss:$2 sm:$0xff] %v275_v56 }
  0x42   : > { %v336_v11 = vadd.f32 %v335_v7, %v334_v6  ;;  %v308_v28 = vld.sshfl [vmem:[#allocation1 + $0x20] sm:$0xff pattern:$0x75316420]  ;;  %v309_v29 = vld.sshfl [vmem:[#allocation1 + $0x28] sm:$0xff pattern:$0x75316420] }
  0x43   : > { %v359_v32 = vsel %vm214_vm0, %v308_v28, 0.0  ;;  %v360_v33 = vsel %vm214_vm0, %v309_v29, 0.0 }
  0x44   : > { %337 = vadd.xlane.f32.xlu2 %v336_v11  ;;  %v302_v13 = vld.sshfl [vmem:[#allocation1] sm:$0xff pattern:$0x75316420]  ;;  %v303_v14 = vld.sshfl [vmem:[#allocation1 + $0x8] sm:$0xff pattern:$0x75316420]  ;;  %v361_v36 = vadd.f32 %v360_v33, %v359_v32 }
  0x45   : > { %v349_v15 = vsel %vm214_vm0, %v302_v13, 0.0  ;;  %v350_v17 = vsel %vm214_vm0, %v303_v14, 0.0 }
  0x46   : > { %v351_v20 = vadd.f32 %v350_v17, %v349_v15  ;;  %v311_v34 = vld.sshfl [vmem:[#allocation1 + $0x30] sm:$0xff pattern:$0x75316420]  ;;  %v312_v35 = vld.sshfl [vmem:[#allocation1 + $0x38] sm:$0xff pattern:$0x75316420] }
  0x47   : > { %v364_v37 = vsel %vm214_vm0, %v311_v34, 0.0  ;;  %v365_v38 = vsel %vm214_vm0, %v312_v35, 0.0 }
  0x48   : > { %342 = vadd.xlane.f32.xlu0 %v341_v12  ;;  %352 = vadd.xlane.f32.xlu1 %v351_v20  ;;  %v305_v22 = vld.sshfl [vmem:[#allocation1 + $0x10] sm:$0xff pattern:$0x75316420]  ;;  %v306_v23 = vld.sshfl [vmem:[#allocation1 + $0x18] sm:$0xff pattern:$0x75316420]  ;;  %v366_v39 = vadd.f32 %v365_v38, %v364_v37 }
  0x49   : > { %v354_v24 = vsel %vm214_vm0, %v305_v22, 0.0  ;;  %v355_v25 = vsel %vm214_vm0, %v306_v23, 0.0  ;;  %v743_v37 = vmov 839922192  }
  0x4a   : > { %v356_v30 = vadd.f32 %v355_v25, %v354_v24  ;;  %v391_v38 = vunpack.c.l.s4 %v743_v37 }
  0x4c   : > { %347 = vadd.xlane.f32.xlu2 %v346_v21 }
  0x50   : > { %357 = vadd.xlane.f32.xlu0 %v356_v30  ;;  %253 = vadd.xlane.f32.xlu1 %v252_v31 }
  0x54   : > { %362 = vadd.xlane.f32.xlu2 %v361_v36 }
  0x58   : > { %367 = vadd.xlane.f32.xlu0 %v366_v39 }
  0xa1   : > { %v229_v40 = vpop.xlane.xlu1 %228 }
  0xa2   : > { %v258_v51 = vsel %vm214_vm0, %v229_v40, 0.0 }
  0xa3   : > { %v219_v41 = vpop.xlane.xlu0 %218 }
  0xa4   : > { %v255_v47 = vsel %vm214_vm0, %v219_v41, 0.0  ;;  %v392_v41 = vunpack.c.0.s8 %v391_v38 }
  0xa5   : > { %v234_v42 = vpop.xlane.xlu2 %233 }
  0xa6   : > { %v260_v56 = vsel %vm214_vm0, %v234_v42, 0.0 }
  0xab   : > { %v224_v43 = vpop.xlane.xlu0 %223  ;;  %v239_v44 = vpop.xlane.xlu1 %238 }
  0xac   : > { %v256_v46 = vsel %vm214_vm0, %v224_v43, 0.0  ;;  %v262_v59 = vsel %vm214_vm0, %v239_v44, 0.0 }
  0xad   : > { %v249_v45 = vpop.xlane.xlu2 %248  ;;  %v257_v48 = vadd.f32 %v256_v46, %v255_v47 }
  0xae   : > { %v266_v17 = vsel %vm214_vm0, %v249_v45, 0.0 }
  0xaf   : > { %v259_v52 = vadd.f32 %v258_v51, %v257_v48 }
  0xb1   : > { %v261_v57 = vadd.f32 %v260_v56, %v259_v52 }
  0xb3   : > { %v244_v49 = vpop.xlane.xlu0 %243  ;;  %v333_v50 = vpop.xlane.xlu1 %332  ;;  %v263_v63 = vadd.f32 %v262_v59, %v261_v57 }
  0xb4   : > { %v369_v53 = vsel %vm214_vm0, %v333_v50, 0.0  ;;  %v264_v7 = vsel %vm214_vm0, %v244_v49, 0.0 }
  0xb5   : > { %v265_v11 = vadd.f32 %v264_v7, %v263_v63 }
  0xb7   : > { %v338_v54 = vpop.xlane.xlu2 %337  ;;  %v267_v21 = vadd.f32 %v266_v17, %v265_v11 }
  0xb8   : > { %v370_v55 = vsel %vm214_vm0, %v338_v54, 0.0 }
  0xb9   : > { %v371_v58 = vadd.f32 %v370_v55, %v369_v53 }
  0xbb   : > { %v343_v60 = vpop.xlane.xlu0 %342  ;;  %v353_v61 = vpop.xlane.xlu1 %352 }
  0xbc   : > { %v372_v62 = vsel %vm214_vm0, %v343_v60, 0.0  ;;  %v376_v13 = vsel %vm214_vm0, %v353_v61, 0.0 }
  0xbd   : > { %v373_v6 = vadd.f32 %v372_v62, %v371_v58 }
  0xbf   : > { %v348_v8 = vpop.xlane.xlu2 %347 }
  0xc0   : > { %v374_v9 = vsel %vm214_vm0, %v348_v8, 0.0 }
  0xc1   : > { %v375_v12 = vadd.f32 %v374_v9, %v373_v6 }
  0xc3   : > { %v358_v14 = vpop.xlane.xlu0 %357  ;;  %v254_v15 = vpop.xlane.xlu1 %253  ;;  %v377_v20 = vadd.f32 %v376_v13, %v375_v12 }
  0xc4   : > { %v378_v18 = vsel %vm214_vm0, %v358_v14, 0.0  ;;  %v268_v19 = vsel %vm214_vm0, %v254_v15, 0.0 }
  0xc5   : > { %v379_v23 = vadd.f32 %v378_v18, %v377_v20  ;;  %v269_v24 = vadd.f32 %v268_v19, %v267_v21 }
  0xc7   : > { %v363_v22 = vpop.xlane.xlu2 %362  ;;  %v384_v27 = vmul.f32 0.00048828125, %v269_v24 }
  0xc8   : > { %v380_v25 = vsel %vm214_vm0, %v363_v22, 0.0 }
  0xc9   : > { %v381_v28 = vadd.f32 %v380_v25, %v379_v23  ;;  %v386_v31 = vmul.f32 %v384_v27, %v384_v27  ;;  %v393_v44 = vperm.slane %v384_v27, %v392_v41 }
  0xcb   : > { %v368_v26 = vpop.xlane.xlu0 %367  ;;  %v395_v47 = vsub.f32 %v842_v1, %v393_v44  ;;  %v396_v48 = vsub.f32 %v848_v3, %v393_v44  ;;  %v397_v49 = vsub.f32 %v840_v0, %v393_v44  ;;  %v398_v51 = vsub.f32 %v845_v2, %v393_v44 }
  0xcc   : > { %v382_v29 = vsel %vm214_vm0, %v368_v26, 0.0  ;;  %v399_v52 = vsub.f32 %v854_v5, %v393_v44  ;;  %v400_v56 = vsub.f32 %v864_v16, %v393_v44  ;;  %v401_v1 = vsub.f32 %v852_v4, %v393_v44 }
  0xcd   : > { %v383_v30 = vadd.f32 %v382_v29, %v381_v28  ;;  %v402_v0 = vsub.f32 %v859_v10, %v393_v44 }
  0xcf   : > { %v385_v32 = vmul.f32 0.00048828125, %v383_v30 }
  0xd1   : > { %v387_v33 = vsub.f32 %v385_v32, %v386_v31 }
  0xd3   : > { %v388_v34 = vmax.f32 %v387_v33, 0.0 }
  0xd5   : > { %v403_v35 = vadd.f32 1e-05, %v388_v34 }
  0xd7   : > { %625 = vrsqrt.f32 %v403_v35  ;;  %vm410_vm2 = vweird.f32 %v403_v35 }
  0xdd   : > { %v626_v36 = vpop.eup %625 }
  0xde   : > { %v405_v39 = vmul.f32 %v626_v36, %v403_v35  ;;  %vm411_vm1 = vweird.f32 %v626_v36 }
  0xdf   : > { %vm412_vm3 = vmor %vm410_vm2, %vm411_vm1 }
  0xe0   : > { %v406_v40 = vmul.f32 %v626_v36, %v405_v39 }
  0xe2   : > { %v407_v42 = vmul.f32 0.5, %v406_v40 }
  0xe4   : > { %v408_v43 = vsub.f32 1.5, %v407_v42 }
  0xe6   : > { %v409_v45 = vmul.f32 %v626_v36, %v408_v43 }
  0xe8   : > { %v413_v46 = vsel %vm412_vm3, %v626_v36, %v409_v45 }
  0xe9   : > { %v418_v50 = vperm.slane %v413_v46, %v392_v41 }
  0xeb   : > { %v420_v53 = vmul.f32 %v418_v50, %v395_v47  ;;  %v421_v54 = vmul.f32 %v418_v50, %v396_v48  ;;  %v422_v55 = vmul.f32 %v418_v50, %v397_v49  ;;  %v423_v57 = vmul.f32 %v418_v50, %v398_v51 }
  0xec   : > { %v424_v3 = vmul.f32 %v418_v50, %v399_v52  ;;  %v425_v2 = vmul.f32 %v418_v50, %v400_v56  ;;  %v426_v5 = vmul.f32 %v418_v50, %v401_v1  ;;  %v427_v58 = vmul.f32 %v418_v50, %v402_v0 }
  0xed   : > { %428 = vst [vmem:[%s154_s9] sm:$0xff] %v420_v53 }
  0xee   : > { %429 = vst [vmem:[%s154_s9 + $0x8] sm:$0xff] %v421_v54 }
  0xef   : > { %430 = vst [vmem:[%s154_s9 + $0x10] sm:$0xff] %v422_v55 }
  0xf0   : > { %431 = vst [vmem:[%s154_s9 + $0x18] sm:$0xff] %v423_v57 }
  0xf1   : > { %432 = vst [vmem:[%s154_s9 + $0x20] sm:$0xff] %v424_v3 }
  0xf2   : > { %433 = vst [vmem:[%s154_s9 + $0x28] sm:$0xff] %v425_v2 }
  0xf3   : > { %434 = vst [vmem:[%s154_s9 + $0x30] sm:$0xff] %v426_v5 }
  0xf4   : > { %435 = vst [vmem:[%s154_s9 + $0x38] sm:$0xff] %v427_v58 }
  0xf5   : > { %684 = shalt.err (!%p681_p13)
}
  0xf6   : > { %s744_s4 = smov 128   ;;  %s745_s5 = smov 8  }
  0xf7   : > { %560 = dma.vmem_to_hbm [thread:$0]  (%p807_p9), %s452_s23, 1024, %s454_s24, %s437_s25, %s744_s4, %s744_s4, %s745_s5  }
  0xf8 PF: > { %s468_s12 = sand.u32 1, %s719_s6   ;;  %p567_p0 = pnand %p544_p12, %p814_p11 }
  0xf9   : > { %s469_s13 = scalar_lea.sflag [#allocation4], %s468_s12 }
  0xfa   : > { %p568_p1 = pneg %p567_p0 }
  0xfc   : > { %714 = dma.done.wait (%p568_p1), %s469_s13, 1024  }
  0xfd   : > { %716 = vsyncadd (%p568_p1), %s469_s13, 4294966272  ;;  %s17_s11 = sadd.s32 1, %s739_s11   ;;  %s982_s6 = smov %s723_s7 }
  0xfe   : > { %p14_p2 = scmp.ge.s32.totalorder %s17_s11, 4   ;;  %s983_s7 = smov %s727_s8 }
  0xff   : > { %s984_s8 = smov %s812_s20  ;;  %s985_s9 = smov %s735_s10 }
 0x100   : > { %s986_s10 = smov %s988_s14  ;;  %16 = sbr.rel (!%p14_p2) target bundleno = 6 (0x6), region = 75 }
 0x105   :  { %475 = vsyncpa [#allocation3], 1 }
 0x106   :  { %477 = vsyncpa [#allocation3 + $0x1], 1 }
 0x107   :  { %478 = vsyncpa [#allocation4], 1 }
 0x108   :  { %480 = vsyncpa [#allocation4 + $0x1], 1 }

</bundles_post_ra>
